<compile_context>
chip_gen: v5e
topology: v5e:2x2
jax: 0.10.0
libtpu: 0.0.40
codegen_flags: <defaults>
</compile_context>

<pallas_src>
import jax
import jax.numpy as jnp
from jax.experimental import pallas as pl
from jax.experimental.pallas import tpu as pltpu

_LANES = 128
_SUBLANES = 8
_BOXES_PER_ROW = _LANES // 4  # 32 boxes per 128-lane row


def _shift_lanes_down(x, k):
    """result[..., i] = x[..., (i + k) % 128] (bring lane i+k down to lane i)."""
    return pltpu.roll(x, shift=(-k) % _LANES, axis=x.ndim - 1)


def _make_iou_loss_kernel(loc_loss_type, tile_rows, steps_per_split, rows_total):
    """Kernel over lane-interleaved ltrb tiles, accumulating into (8,128) scratch."""

    def kernel(pred_ref, tgt_ref, out_ref, acc_ref):
        c = pl.program_id(0)  # core-split axis ("parallel")
        s = pl.program_id(1)  # sequential reduction axis ("arbitrary")

        @pl.when(s == 0)
        def _():
            acc_ref[...] = jnp.zeros_like(acc_ref)

        shape = (tile_rows, _LANES)
        lane = jax.lax.broadcasted_iota(jnp.int32, shape, 1)
        row = jax.lax.broadcasted_iota(jnp.int32, shape, 0)
        comp = lane & 3  # 0=left 1=top 2=right 3=bottom (interleaved layout)

        pred = pred_ref[...]
        tgt = tgt_ref[...]
        # torch.relu applies to target left/top only.
        tgt = jnp.where(comp < 2, jnp.maximum(tgt, 0.0), tgt)

        # In-register de-interleave via XLU lane rotations:
        #   pair = x + shift2(x)  -> lane 4k: (left+right), lane 4k+1: (top+bottom)
        #   prod = pair * shift1(pair) -> lane 4k: per-box product.
        p2 = _shift_lanes_down(pred, 2)
        t2 = _shift_lanes_down(tgt, 2)
        pair_pred = pred + p2
        pair_tgt = tgt + t2
        # min/max commute with the lane shift, so reuse p2/t2 instead of rolling again.
        pair_min = jnp.minimum(pred, tgt) + jnp.minimum(p2, t2)

        def box_prod(pair):
            return pair * _shift_lanes_down(pair, 1)

        pred_area = box_prod(pair_pred)
        target_area = box_prod(pair_tgt)
        area_intersect = box_prod(pair_min)
        area_union = target_area + pred_area - area_intersect

        ious = (area_intersect + 1.0) * pl.reciprocal(area_union + 1.0, approx=False)

        if loc_loss_type == 'iou':
            losses = -jnp.log(ious)
        elif loc_loss_type == 'linear_iou':
            losses = 1.0 - ious
        elif loc_loss_type == 'giou':
            pair_max = jnp.maximum(pred, tgt) + jnp.maximum(p2, t2)
            ac_union = box_prod(pair_max)
            gious = ious - (ac_union - area_union) * pl.reciprocal(ac_union, approx=False)
            losses = 1.0 - gious
        else:
            raise NotImplementedError(loc_loss_type)

        # Per-box results live only at lanes 4k.  Rows past the real data
        # (ragged last block / fully out-of-range logical blocks of the core
        # split) are zeroed with a NaN-safe select before they can touch the
        # accumulator.  Unit-box padding rows (see wrapper) are in-range and
        # contribute exactly 0 for all three loss types.
        blk = c * steps_per_split + s
        rows_left = rows_total - blk * tile_rows  # scalar; may be <= 0
        valid = (comp == 0) & (row < rows_left)
        masked = jnp.where(valid, losses, 0.0)

        acc_ref[...] += masked.reshape(
            tile_rows // _SUBLANES, _SUBLANES, _LANES).sum(axis=0)

        @pl.when(s == pl.num_programs(1) - 1)
        def _():
            out_ref[...] = acc_ref[...]

    return kernel


def iou_loss(pred, target, loc_loss_type='iou', reduction='sum', max_tile_rows=8192):
    """Pallas TPU implementation of IOULoss.forward with weight=None, reduction='sum'.

    pred, target: (N, 4) float32 arrays, columns [left, top, right, bottom].
    """
    assert reduction == 'sum', "only reduction='sum' implemented in-kernel"
    # TODO(synk): reduction='none'/'batch' and the optional `weight` multiply
    # are not wired through the kernel (weight=None, reduction='sum' only).

    n = pred.shape[0]
    assert pred.shape == (n, 4) and target.shape == (n, 4)
    if n == 0:
        return jnp.zeros((), jnp.float32)

    pred_f = jnp.asarray(pred, jnp.float32)
    target_f = jnp.asarray(target, jnp.float32)

    # Zero-copy lane-dense view: (N, 4) row-major == (rows, 128) contiguous,
    # 32 boxes per row with components interleaved every 4 lanes.  Only if N is
    # not a multiple of 32 do we append <= 31 unit boxes (zero extra HBM
    # traffic in the aligned case; unit boxes contribute exactly 0 loss).
    n_pad = -(-n // _BOXES_PER_ROW) * _BOXES_PER_ROW
    if n_pad != n:
        pad = jnp.ones((n_pad - n, 4), jnp.float32)
        pred_f = jnp.concatenate([pred_f, pad], axis=0)
        target_f = jnp.concatenate([target_f, pad], axis=0)
    rows = n_pad // _BOXES_PER_ROW
    pred_v = pred_f.reshape(rows, _LANES)
    target_v = target_f.reshape(rows, _LANES)

    # Tile selection: biggest sublane-aligned block up to max_tile_rows.
    # Default 8192 rows = 4 MiB per input block (16 MiB double-buffered),
    # within the 32 MiB scoped-VMEM limit requested below on every generation,
    # keeping the ~0.35 us/step pipeline overhead small.
    max_tile_rows = max(_SUBLANES, (max_tile_rows // _SUBLANES) * _SUBLANES)
    tile_rows = min(max_tile_rows, -(-rows // _SUBLANES) * _SUBLANES)
    steps_total = -(-rows // tile_rows)

    # Leading "parallel" axis: v7x's two TensorCores each reduce half of the
    # row range into their own lane-dense partial block (no-op on 1-TC chips).
    num_splits = 2 if steps_total >= 2 else 1
    steps_per_split = -(-steps_total // num_splits)

    def in_map(c, s):
        blk = c * steps_per_split + s
        # Clamp so a fully out-of-range logical block (odd steps_total) still
        # maps to a valid DMA; its contribution is masked to zero in-kernel.
        return (jnp.minimum(blk, steps_total - 1), 0)

    kernel = _make_iou_loss_kernel(loc_loss_type, tile_rows, steps_per_split, rows)

    partials = pl.pallas_call(
        kernel,
        out_shape=jax.ShapeDtypeStruct((num_splits * _SUBLANES, _LANES), jnp.float32),
        grid_spec=pltpu.PrefetchScalarGridSpec(
            num_scalar_prefetch=0,
            grid=(num_splits, steps_per_split),
            in_specs=[
                pl.BlockSpec((tile_rows, _LANES), in_map),
                pl.BlockSpec((tile_rows, _LANES), in_map),
            ],
            out_specs=pl.BlockSpec((_SUBLANES, _LANES), lambda c, s: (c, 0)),
            scratch_shapes=[pltpu.VMEM((_SUBLANES, _LANES), jnp.float32)],
        ),
        compiler_params=pltpu.CompilerParams(
            dimension_semantics=("parallel", "arbitrary"),
            vmem_limit_bytes=32 * 1024 * 1024),
    )(pred_v, target_v)

    # One (or two) lane-dense (8,128) partial blocks -> scalar in the wrapper.
    return jnp.sum(partials)


def _iou_loss_ref(pred, target, loc_loss_type='iou'):
    """Pure-JAX reference mirroring the PyTorch module (weight=None, sum)."""
    pred = jnp.asarray(pred, jnp.float32)
    target = jnp.asarray(target, jnp.float32)
    pred_left, pred_top, pred_right, pred_bottom = (pred[:, i] for i in range(4))
    target_left = jnp.maximum(target[:, 0], 0.0)
    target_top = jnp.maximum(target[:, 1], 0.0)
    target_right = target[:, 2]
    target_bottom = target[:, 3]
    target_area = (target_left + target_right) * (target_top + target_bottom)
    pred_area = (pred_left + pred_right) * (pred_top + pred_bottom)
    w_i = jnp.minimum(pred_left, target_left) + jnp.minimum(pred_right, target_right)
    h_i = jnp.minimum(pred_bottom, target_bottom) + jnp.minimum(pred_top, target_top)
    g_w = jnp.maximum(pred_left, target_left) + jnp.maximum(pred_right, target_right)
    g_h = jnp.maximum(pred_bottom, target_bottom) + jnp.maximum(pred_top, target_top)
    ac_union = g_w * g_h
    area_intersect = w_i * h_i
    area_union = target_area + pred_area - area_intersect
    ious = (area_intersect + 1.0) / (area_union + 1.0)
    gious = ious - (ac_union - area_union) / ac_union
    if loc_loss_type == 'iou':
        losses = -jnp.log(ious)
    elif loc_loss_type == 'linear_iou':
        losses = 1.0 - ious
    else:
        losses = 1.0 - gious
    return losses.sum()


if __name__ == "__main__":
    run = jax.jit(
        iou_loss, static_argnames=("loc_loss_type", "reduction", "max_tile_rows"))

    def make_boxes(key, n):
        # Valid FCOS-style ltrb regression distances: pred strictly positive,
        # target right/bottom strictly positive, target left/top may dip
        # slightly negative to exercise the in-kernel relu.  Keeps every iou in
        # (0, 1], so -log(iou) stays finite (as in PyTorch).
        k1, k2, k3 = jax.random.split(key, 3)
        pred = jax.random.uniform(k1, (n, 4), jnp.float32, minval=0.1, maxval=5.0)
        tgt_lt = jax.random.uniform(k2, (n, 2), jnp.float32, minval=-0.3, maxval=5.0)
        tgt_rb = jax.random.uniform(k3, (n, 2), jnp.float32, minval=0.1, maxval=5.0)
        return pred, jnp.concatenate([tgt_lt, tgt_rb], axis=1)

    key = jax.random.PRNGKey(0)
    # (N, max_tile_rows): exercises the zero-copy path (N % 32 == 0), the
    # <=31-box pad path, the ragged last block, a multi-step grid, and the
    # 2-way core split including an odd step count that hits the clamped
    # index_map.
    configs = [(96, 8192), (1000, 8192), (1280, 16), (4096, 8)]
    for n, mtr in configs:
        key, sub = jax.random.split(key)
        pred, target = make_boxes(sub, n)
        for llt in ('iou', 'linear_iou', 'giou'):
            out = jax.block_until_ready(
                run(pred, target, loc_loss_type=llt, max_tile_rows=mtr))
            ref = _iou_loss_ref(pred, target, loc_loss_type=llt)
            assert bool(jnp.isfinite(out)), (n, mtr, llt, out)
            assert bool(jnp.allclose(out, ref, rtol=2e-5, atol=1e-3)), (
                n, mtr, llt, out, ref)

    print("KERNEL_OK")
</pallas_src>

<mosaic_0001>
module attributes {stable_mosaic.version = 11 : i64} {
  func.func @kernel(%arg0: i32, %arg1: i32, %arg2: memref<8x128xf32, #tpu.memory_space<vmem>>, %arg3: memref<8x128xf32, #tpu.memory_space<vmem>>, %arg4: memref<8x128xf32, #tpu.memory_space<vmem>>, %arg5: memref<8x128xf32, #tpu.memory_space<vmem>>) attributes {dimension_semantics = [#tpu.dimension_semantics<parallel>, #tpu.dimension_semantics<arbitrary>], iteration_bounds = array<i64: 1, 1>, scalar_prefetch = 0 : i64, scratch_operands = 1 : i64, tpu.core_type = #tpu.core_type<tc>, window_params = [{transform_indices = @transform_0, window_bounds = array<i64: 8, 128>}, {transform_indices = @transform_1, window_bounds = array<i64: 8, 128>}, {transform_indices = @transform_2, window_bounds = array<i64: 8, 128>}]} {
    %c0_i32 = arith.constant 0 : i32
    %0 = arith.cmpi eq, %arg1, %c0_i32 : i32
    %1 = arith.extui %0 : i1 to i32
    %c0_i32_0 = arith.constant 0 : i32
    %2 = arith.cmpi ne, %1, %c0_i32_0 : i32
    scf.if %2 {
      %cst_20 = arith.constant 0.000000e+00 : f32
      %57 = vector.broadcast %cst_20 : f32 to vector<8x128xf32>
      %c0_21 = arith.constant 0 : index
      %c0_22 = arith.constant 0 : index
      %58 = vector.load %arg5[%c0_21, %c0_22] : memref<8x128xf32, #tpu.memory_space<vmem>>, vector<8x128xf32>
      tpu.vector_store %arg5[%c0_21, %c0_22], %57 {strides = array<i32>} : memref<8x128xf32, #tpu.memory_space<vmem>>, vector<8x128xf32>,
    } else {
    }
    %3 = tpu.iota {dimensions = array<i32: 1>} : vector<8x128xi32>
    %4 = tpu.iota {dimensions = array<i32: 0>} : vector<8x128xi32>
    %c3_i32 = arith.constant 3 : i32
    %5 = vector.broadcast %c3_i32 : i32 to vector<8x128xi32>
    %6 = arith.andi %3, %5 : vector<8x128xi32>
    %c0 = arith.constant 0 : index
    %c0_1 = arith.constant 0 : index
    %7 = vector.load %arg2[%c0, %c0_1] : memref<8x128xf32, #tpu.memory_space<vmem>>, vector<8x128xf32>
    %c0_2 = arith.constant 0 : index
    %c0_3 = arith.constant 0 : index
    %8 = vector.load %arg3[%c0_2, %c0_3] : memref<8x128xf32, #tpu.memory_space<vmem>>, vector<8x128xf32>
    %c2_i32 = arith.constant 2 : i32
    %9 = vector.broadcast %c2_i32 : i32 to vector<8x128xi32>
    %10 = arith.cmpi slt, %6, %9 : vector<8x128xi32>
    %cst = arith.constant 0.000000e+00 : f32
    %11 = vector.broadcast %cst : f32 to vector<8x128xf32>
    %12 = arith.maximumf %8, %11 : vector<8x128xf32>
    %13 = arith.select %10, %12, %8 : vector<8x128xi1>, vector<8x128xf32>
    %c126_i32 = arith.constant 126 : i32
    %14 = tpu.dynamic_rotate %7 by %c126_i32 dim 1 : vector<8x128xf32>, i32 -> vector<8x128xf32>
    %c126_i32_4 = arith.constant 126 : i32
    %15 = tpu.dynamic_rotate %13 by %c126_i32_4 dim 1 : vector<8x128xf32>, i32 -> vector<8x128xf32>
    %16 = arith.addf %7, %14 : vector<8x128xf32>
    %17 = arith.addf %13, %15 : vector<8x128xf32>
    %18 = arith.minimumf %7, %13 : vector<8x128xf32>
    %19 = arith.minimumf %14, %15 : vector<8x128xf32>
    %20 = arith.addf %18, %19 : vector<8x128xf32>
    %c127_i32 = arith.constant 127 : i32
    %21 = tpu.dynamic_rotate %16 by %c127_i32 dim 1 : vector<8x128xf32>, i32 -> vector<8x128xf32>
    %22 = arith.mulf %16, %21 : vector<8x128xf32>
    %c127_i32_5 = arith.constant 127 : i32
    %23 = tpu.dynamic_rotate %17 by %c127_i32_5 dim 1 : vector<8x128xf32>, i32 -> vector<8x128xf32>
    %24 = arith.mulf %17, %23 : vector<8x128xf32>
    %c127_i32_6 = arith.constant 127 : i32
    %25 = tpu.dynamic_rotate %20 by %c127_i32_6 dim 1 : vector<8x128xf32>, i32 -> vector<8x128xf32>
    %26 = arith.mulf %20, %25 : vector<8x128xf32>
    %27 = arith.addf %24, %22 : vector<8x128xf32>
    %28 = arith.subf %27, %26 : vector<8x128xf32>
    %cst_7 = arith.constant 1.000000e+00 : f32
    %29 = vector.broadcast %cst_7 : f32 to vector<8x128xf32>
    %30 = arith.addf %26, %29 : vector<8x128xf32>
    %cst_8 = arith.constant 1.000000e+00 : f32
    %31 = vector.broadcast %cst_8 : f32 to vector<8x128xf32>
    %32 = arith.addf %28, %31 : vector<8x128xf32>
    %33 = tpu.reciprocal %32 : vector<8x128xf32> -> vector<8x128xf32>
    %34 = arith.mulf %30, %33 : vector<8x128xf32>
    %35 = math.log %34 : vector<8x128xf32>
    %cst_9 = arith.constant 0.000000e+00 : f32
    %36 = vector.broadcast %cst_9 : f32 to vector<8x128xf32>
    %37 = arith.subf %36, %35 : vector<8x128xf32>
    %c1_i32 = arith.constant 1 : i32
    %38 = arith.muli %arg0, %c1_i32 : i32
    %39 = arith.addi %38, %arg1 : i32
    %c8_i32 = arith.constant 8 : i32
    %40 = arith.muli %39, %c8_i32 : i32
    %c3_i32_10 = arith.constant 3 : i32
    %41 = arith.subi %c3_i32_10, %40 : i32
    %c0_i32_11 = arith.constant 0 : i32
    %42 = vector.broadcast %c0_i32_11 : i32 to vector<8x128xi32>
    %43 = arith.cmpi eq, %6, %42 : vector<8x128xi32>
    %44 = vector.broadcast %41 : i32 to vector<8x128xi32>
    %45 = arith.cmpi slt, %4, %44 : vector<8x128xi32>
    %46 = arith.andi %43, %45 : vector<8x128xi1>
    %cst_12 = arith.constant 0.000000e+00 : f32
    %47 = vector.broadcast %cst_12 : f32 to vector<8x128xf32>
    %48 = arith.select %46, %37, %47 : vector<8x128xi1>, vector<8x128xf32>
    %c0_13 = arith.constant 0 : index
    %c0_14 = arith.constant 0 : index
    %49 = vector.load %arg5[%c0_13, %c0_14] : memref<8x128xf32, #tpu.memory_space<vmem>>, vector<8x128xf32>
    %50 = vector.shape_cast %48 : vector<8x128xf32> to vector<1x8x128xf32>
    %cst_15 = arith.constant dense<0.000000e+00> : vector<8x128xf32>
    %51 = vector.multi_reduction <add>, %50, %cst_15 [0] : vector<1x8x128xf32> to vector<8x128xf32>
    %52 = arith.addf %49, %51 : vector<8x128xf32>
    %c0_16 = arith.constant 0 : index
    %c0_17 = arith.constant 0 : index
    %53 = vector.load %arg5[%c0_16, %c0_17] : memref<8x128xf32, #tpu.memory_space<vmem>>, vector<8x128xf32>
    tpu.vector_store %arg5[%c0_16, %c0_17], %52 {strides = array<i32>} : memref<8x128xf32, #tpu.memory_space<vmem>>, vector<8x128xf32>,
    %c0_i32_18 = arith.constant 0 : i32
    %54 = arith.cmpi eq, %arg1, %c0_i32_18 : i32
    %55 = arith.extui %54 : i1 to i32
    %c0_i32_19 = arith.constant 0 : i32
    %56 = arith.cmpi ne, %55, %c0_i32_19 : i32
    scf.if %56 {
      %c0_20 = arith.constant 0 : index
      %c0_21 = arith.constant 0 : index
      %57 = vector.load %arg5[%c0_20, %c0_21] : memref<8x128xf32, #tpu.memory_space<vmem>>, vector<8x128xf32>
      %c0_22 = arith.constant 0 : index
      %c0_23 = arith.constant 0 : index
      %58 = vector.load %arg4[%c0_22, %c0_23] : memref<8x128xf32, #tpu.memory_space<vmem>>, vector<8x128xf32>
      tpu.vector_store %arg4[%c0_22, %c0_23], %57 {strides = array<i32>} : memref<8x128xf32, #tpu.memory_space<vmem>>, vector<8x128xf32>,
    } else {
    }
    return
  }
  func.func @transform_0(%arg0: i32, %arg1: i32) -> (i32, i32) {
    %c1_i32 = arith.constant 1 : i32
    %0 = arith.muli %arg0, %c1_i32 : i32
    %1 = arith.addi %0, %arg1 : i32
    %c0_i32 = arith.constant 0 : i32
    %2 = arith.minsi %1, %c0_i32 : i32
    %c0_i32_0 = arith.constant 0 : i32
    %c0_i32_1 = arith.constant 0 : i32
    return %2, %c0_i32_0 : i32, i32
  }
  func.func @transform_1(%arg0: i32, %arg1: i32) -> (i32, i32) {
    %c1_i32 = arith.constant 1 : i32
    %0 = arith.muli %arg0, %c1_i32 : i32
    %1 = arith.addi %0, %arg1 : i32
    %c0_i32 = arith.constant 0 : i32
    %2 = arith.minsi %1, %c0_i32 : i32
    %c0_i32_0 = arith.constant 0 : i32
    %c0_i32_1 = arith.constant 0 : i32
    return %2, %c0_i32_0 : i32, i32
  }
  func.func @transform_2(%arg0: i32, %arg1: i32) -> (i32, i32) {
    %c0_i32 = arith.constant 0 : i32
    %c0_i32_0 = arith.constant 0 : i32
    return %arg0, %c0_i32 : i32, i32
  }
}

</mosaic_0001>

<bundles_post_ra>
// kernel: iou_loss.1
= control target key start
LH: loop header
LB: loop body
LE: loop exit
PB: predicated region body
PF: predicated region fallthrough
CT: control target
= control target key end

     0   :  { %v100_v0 = vlaneseq  ;;  %s189_s13 = smov 126   ;;  %s221_s0 = inlined_call_operand.vmem [shape: f32[3,128], index: 0, kind: input, shape index: {}]   ;;  %s222_s1 = inlined_call_operand.vmem [shape: f32[3,128], index: 1, kind: input, shape index: {}]   ;;  %s223_s2 = inlined_call_operand.vmem [shape: f32[8,128], index: 2, kind: output, shape index: {}]  }
   0x1   :  { %v105_v1 = vld [vmem:[%s221_s0] sm:$0xff]  ;;  %s190_s0 = smov 127  }
   0x2   :  { %v106_v2 = vld [vmem:[%s222_s1] sm:$0xff]  ;;  %110 = vrot.lane.b32.xlu0 %v105_v1, %s189_s13  ;;  %v101_v3 = vand.u32 127, %v100_v0  ;;  %v103_v4 = vshrl.u32 %v100_v0, 7 }
   0x3   :  { %v108_v5 = vmax.f32 %v106_v2, 0.0 }
   0x4   :  { %v104_v6 = vand.u32 3, %v101_v3  ;;  %vm155_vm0 = vcmp.lt.s32.totalorder %v103_v4, 3 }
   0x6   :  { %vm107_vm1 = vcmp.lt.s32.totalorder %v104_v6, 2  ;;  %vm153_vm2 = vcmp.eq.s32.totalorder %v104_v6, 0 }
   0x7   :  { %v109_v7 = vsel %vm107_vm1, %v108_v5, %v106_v2  ;;  %vm212_vm3 = vmand %vm153_vm2, %vm155_vm0 }
   0x8   :  { %v116_v11 = vmin.f32 %v105_v1, %v109_v7 }
   0xa   :  { %112 = vrot.lane.b32.xlu0 %v109_v7, %s189_s13 }
  0x74   :  { %v111_v9 = vpop.permute.xlu0 %110 }
  0x75   :  { %v114_v10 = vadd.f32 %v111_v9, %v105_v1 }
  0x77   :  { %119 = vrot.lane.b32.xlu1 %v114_v10, %s190_s0 }
  0x7c   :  { %v113_v12 = vpop.permute.xlu0 %112 }
  0x7d   :  { %v115_v13 = vadd.f32 %v113_v12, %v109_v7  ;;  %v117_v14 = vmin.f32 %v111_v9, %v113_v12 }
  0x7f   :  { %122 = vrot.lane.b32.xlu1 %v115_v13, %s190_s0  ;;  %v118_v15 = vadd.f32 %v117_v14, %v116_v11 }
  0x81   :  { %125 = vrot.lane.b32.xlu2 %v118_v15, %s190_s0 }
  0xdb   :  { %v126_v17 = vpop.permute.xlu2 %125 }
  0xdc   :  { %v127_v21 = vmul.f32 %v126_v17, %v118_v15 }
  0xde   :  { %v130_v33 = vadd.f32 1.0, %v127_v21 }
  0xe9   :  { %v120_v16 = vpop.permute.xlu1 %119 }
  0xea   :  { %v121_v19 = vmul.f32 %v120_v16, %v114_v10 }
  0xf1   :  { %v123_v18 = vpop.permute.xlu1 %122 }
  0xf2   :  { %v124_v20 = vmul.f32 %v123_v18, %v115_v13 }
  0xf4   :  { %v128_v22 = vadd.f32 %v124_v20, %v121_v19 }
  0xf6   :  { %v129_v23 = vsub.f32 %v128_v22, %v127_v21 }
  0xf8   :  { %v131_v24 = vadd.f32 1.0, %v129_v23 }
  0xfa   :  { %185 = vrcp.f32 %v131_v24  ;;  %v143_v28 = vand.u32 2147483648, %v131_v24  ;;  %v141_v30 = vand.u32 2147483647, %v131_v24  ;;  %vm137_vm5 = vweird.f32 %v131_v24 }
  0xfc   :  { %v144_v32 = vor.u32 1.1754944e-38, %v143_v28  ;;  %vm142_vm7 = vcmp.eq.f32.partialorder %v141_v30, 8.507059e+37 }
 0x100   :  { %v186_v25 = vpop.eup %185 }
 0x101   :  { %v133_v26 = vmul.f32 %v186_v25, %v131_v24  ;;  %vm138_vm4 = vweird.f32 %v186_v25 }
 0x102   :  { %vm139_vm6 = vmor %vm137_vm5, %vm138_vm4 }
 0x103   :  { %v134_v27 = vsub.f32 1.0, %v133_v26 }
 0x105   :  { %v135_v29 = vmul.f32 %v186_v25, %v134_v27 }
 0x107   :  { %v136_v31 = vadd.f32 %v186_v25, %v135_v29 }
 0x109   :  { %v140_v34 = vsel %vm139_vm6, %v186_v25, %v136_v31 }
 0x10a   :  { %v145_v35 = vsel %vm142_vm7, %v144_v32, %v140_v34 }
 0x10b   :  { %v146_v36 = vmul.f32 %v145_v35, %v130_v33 }
 0x10d   :  { %187 = vlog2.f32 %v146_v36 }
 0x113   :  { %v188_v37 = vpop.eup %187 }
 0x114   :  { %v148_v38 = vmul.f32 0.6931472, %v188_v37 }
 0x116   :  { %v149_v39 = vsub.f32 0.0, %v148_v38 }
 0x118   :  { %v157_v40 = vsel %vm212_vm3, %v149_v39, 0.0 }
 0x119   :  { %166 = vst [vmem:[%s223_s2] sm:$0xff] %v157_v40 }

</bundles_post_ra>
